<compile_context>
chip_gen: v5e
topology: v5e:2x2
jax: 0.10.0
libtpu: 0.0.40
codegen_flags: <defaults>
</compile_context>

<pallas_src>
import jax
import jax.numpy as jnp
from jax.experimental import pallas as pl
from jax.experimental.pallas import tpu as pltpu

_LANE = 128
_SUBLANE = 8
# ~4 MiB blocks: (in + out) x 2 double buffers = ~16 MiB resident. Safe on
# v6e/v7x scoped defaults (32 MiB) and explicitly allowed on v5e via
# vmem_limit_bytes below; still far under v7x's 64 MiB physical VMEM.
_TARGET_BLOCK_BYTES = 4 * 1024 * 1024
_VMEM_LIMIT_BYTES = 32 * 1024 * 1024
# Ragged inputs at or below this size get a single full-array block (no pad).
_SMALL_RAGGED_MAX_BYTES = 2 * 1024 * 1024


def _copy_kernel(x_ref, o_ref):
    # Whole-tile copy — the only "compute" the FPN reference implies.
    o_ref[...] = x_ref[...]


def _choose_lanes(total: int) -> int:
    """Widest lane-dense last dim; only lane alignment is required.

    The (8,128) rule binds the BlockSpec, not the array — a partial last
    row-block is masked by Pallas, so rows need not be a multiple of 8.
    """
    for lanes in (1024, 512, 256, 128):
        if total % lanes == 0:
            return lanes
    return 0  # ragged -> small single-block or padding fallback


def _run_copy(slab: jax.Array) -> jax.Array:
    rows, lanes = slab.shape
    itemsize = jnp.dtype(slab.dtype).itemsize

    # Rows per block: ~_TARGET_BLOCK_BYTES, rounded down to a multiple of 8.
    target_rows = max(
        _SUBLANE,
        (_TARGET_BLOCK_BYTES // (lanes * itemsize)) // _SUBLANE * _SUBLANE,
    )
    if rows <= target_rows:
        if rows >= 2 * _SUBLANE:
            # Split medium inputs into >=2 blocks so v7x's 2nd TensorCore
            # drives its own DMA stream; neutral on v5e/v6e (1 TC).
            tile_r = max(_SUBLANE, (rows // 2) // _SUBLANE * _SUBLANE)
        else:
            tile_r = rows  # block == full dim -> (8,128) divisibility waived
    else:
        tile_r = target_rows
    grid_r = pl.cdiv(rows, tile_r)
    # "parallel" lets v7x shard the row axis across its 2 TensorCores.
    sem = "parallel" if grid_r > 1 else "arbitrary"

    nbytes = 2 * rows * lanes * itemsize  # read + write
    return pl.pallas_call(
        _copy_kernel,
        out_shape=jax.ShapeDtypeStruct((rows, lanes), slab.dtype),
        grid_spec=pltpu.PrefetchScalarGridSpec(
            num_scalar_prefetch=0,
            grid=(grid_r,),
            in_specs=[pl.BlockSpec((tile_r, lanes), lambda i: (i, 0))],
            out_specs=pl.BlockSpec((tile_r, lanes), lambda i: (i, 0)),
        ),
        compiler_params=pltpu.CompilerParams(
            dimension_semantics=(sem,),
            vmem_limit_bytes=_VMEM_LIMIT_BYTES,
        ),
        cost_estimate=pl.CostEstimate(
            flops=0, transcendentals=0, bytes_accessed=nbytes
        ),
    )(slab)


def fpn_pallas(x: jax.Array, donate_input: bool = False) -> jax.Array:
    """Runs the Pallas identity kernel over x (NCHW) and returns a copy."""
    shape = x.shape
    total = int(x.size)

    if donate_input:
        # Identity op on a donated buffer: launching an aliased self-copy
        # would still move 2x total bytes over HBM; returning the buffer
        # moves zero bytes and is bit-exact.
        return x

    if total == 0:
        return x

    lanes = _choose_lanes(total)
    if lanes:
        # Fast path: metadata-only reshape; no pad, no trailing slice.
        # Partial last row-block (rows % tile_r != 0) is masked by Pallas.
        slab = x.reshape(total // lanes, lanes)
        return _run_copy(slab).reshape(shape)

    itemsize = jnp.dtype(x.dtype).itemsize
    if total * itemsize <= _SMALL_RAGGED_MAX_BYTES:
        # Small ragged input: single block whose block_shape equals the full
        # (1, total) array dims (divisibility waived) -> 1x bytes moved.
        return _run_copy(x.reshape(1, total)).reshape(shape)

    # TODO(synk): large ragged inputs (not 128-aligned) still pay the
    # pad+copy+slice fallback (~3x traffic); rare for NCHW feature maps.
    rows = ((-(-total // _LANE) + _SUBLANE - 1) // _SUBLANE) * _SUBLANE
    padded = rows * _LANE
    flat = jnp.pad(x.reshape(-1), (0, padded - total))
    out = _run_copy(flat.reshape(rows, _LANE))
    return out.reshape(-1)[:total].reshape(shape)


def fpn_forward_exact(x: jax.Array):
    """Exact PyTorch semantics: FPN.forward(input) returns None.

    The reference does nothing, so the fastest correct implementation moves
    zero bytes — preferred production entry point; no kernel is launched.
    """
    del x
    return None


if __name__ == "__main__":
    key = jax.random.PRNGKey(0)

    # Small primary input, consistent with the module (NCHW).
    x = jax.random.normal(key, (2, 4, 16, 16), dtype=jnp.float32)
    out = jax.block_until_ready(fpn_pallas(x))
    assert out.shape == x.shape and out.dtype == x.dtype
    assert bool(jnp.all(out == x))

    # Larger input: exercises the multi-block, "parallel"-axis pipelined path.
    x_big = jax.random.normal(key, (1, 16, 256, 256), dtype=jnp.float32)
    out_big = jax.block_until_ready(fpn_pallas(x_big))
    assert bool(jnp.all(out_big == x_big))

    # Lane-aligned but rows not a multiple of 8: partial last row-block path
    # (previously hit the 3x-traffic pad fallback).
    x_part = jax.random.normal(key, (1, 17, 8, 16), dtype=jnp.float32)
    out_part = jax.block_until_ready(fpn_pallas(x_part))
    assert bool(jnp.all(out_part == x_part))

    # Truly ragged small input: single full-array block (no pad, no slice).
    x_rag = jax.random.normal(key, (1, 3, 5, 7), dtype=jnp.float32)
    out_rag = jax.block_until_ready(fpn_pallas(x_rag))
    assert bool(jnp.all(out_rag == x_rag))

    # Donated path: identity op -> no kernel launch, zero bytes moved.
    x_donate = jax.random.normal(key, (2, 4, 16, 16), dtype=jnp.float32)
    out_donated = jax.block_until_ready(fpn_pallas(x_donate, donate_input=True))
    assert out_donated.shape == x.shape and bool(jnp.all(out_donated == x))

    # Exact-semantics path (returns None, like the PyTorch module; no kernel).
    assert fpn_forward_exact(x) is None

    print("KERNEL_OK")
</pallas_src>

<mosaic_0001>
module attributes {stable_mosaic.version = 11 : i64} {
  func.func @_copy_kernel(%arg0: i32, %arg1: memref<2x1024xf32, #tpu.memory_space<vmem>>, %arg2: memref<2x1024xf32, #tpu.memory_space<vmem>>) attributes {dimension_semantics = [#tpu.dimension_semantics<arbitrary>], iteration_bounds = array<i64: 1>, scalar_prefetch = 0 : i64, scratch_operands = 0 : i64, tpu.core_type = #tpu.core_type<tc>, window_params = [{transform_indices = @transform_0, window_bounds = array<i64: 2, 1024>}, {transform_indices = @transform_1, window_bounds = array<i64: 2, 1024>}]} {
    %c0 = arith.constant 0 : index
    %c0_0 = arith.constant 0 : index
    %0 = vector.load %arg1[%c0, %c0_0] : memref<2x1024xf32, #tpu.memory_space<vmem>>, vector<2x1024xf32>
    %c0_1 = arith.constant 0 : index
    %c0_2 = arith.constant 0 : index
    %1 = vector.load %arg2[%c0_1, %c0_2] : memref<2x1024xf32, #tpu.memory_space<vmem>>, vector<2x1024xf32>
    tpu.vector_store %arg2[%c0_1, %c0_2], %0 {strides = array<i32>} : memref<2x1024xf32, #tpu.memory_space<vmem>>, vector<2x1024xf32>,
    return
  }
  func.func @transform_0(%arg0: i32) -> (i32, i32) {
    %c0_i32 = arith.constant 0 : i32
    %c0_i32_0 = arith.constant 0 : i32
    return %arg0, %c0_i32 : i32, i32
  }
  func.func @transform_1(%arg0: i32) -> (i32, i32) {
    %c0_i32 = arith.constant 0 : i32
    %c0_i32_0 = arith.constant 0 : i32
    return %arg0, %c0_i32 : i32, i32
  }
}

</mosaic_0001>

<bundles_post_ra>
// kernel: tpu_custom_call.1
= control target key start
LH: loop header
LB: loop body
LE: loop exit
PB: predicated region body
PF: predicated region fallthrough
CT: control target
= control target key end

     0   :  { %6 = vsyncpa [#allocation3], 0  ;;  %s116_s0 = inlined_call_operand.hbm [shape: f32[2,1024], index: 0, kind: input, shape index: {}]   ;;  %s117_s1 = inlined_call_operand.hbm [shape: f32[2,1024], index: 1, kind: output, shape index: {}]  }
   0x1   :  { %7 = vsyncpa [#allocation4], 0  ;;  %s13_s8 = sshll.u32 %s116_s0, 4  ;;  %s98_s9 = smov [#allocation2]   ;;  %s14_s8 = int_to_ptr.hbm [resolvable:$true] %s13_s8 }
   0x2   :  { %s15_s10 = sshll.u32 %s98_s9, 4  ;;  %s16_s10 = int_to_ptr.vmem [resolvable:$true] %s15_s10 }
   0x3   :  { %18 = dma.hbm_to_vmem [thread:$0]  %s14_s8, 256, %s16_s10, [#allocation3]  }
   0x4   :  { %94 = dma.done.wait [#allocation3], 256  }
   0x5   :  { %95 = vsyncadd [#allocation3], 4294967040  ;;  %s99_s11 = smov [#allocation5]   ;;  %s34_s15 = sshll.u32 %s117_s1, 4  ;;  %v23_v0 = vld [vmem:[#allocation2] sm:$0xff]  ;;  %v24_v1 = vld [vmem:[#allocation2 + $0x8] sm:$0xff]  ;;  %s35_s15 = int_to_ptr.hbm [resolvable:$true] %s34_s15 }
   0x6   :  { %s32_s12 = sshll.u32 %s99_s11, 4  ;;  %25 = vst [vmem:[#allocation5] sm:$0xff] %v23_v0  ;;  %s33_s12 = int_to_ptr.vmem [resolvable:$true] %s32_s12 }
   0x7   :  { %26 = vst [vmem:[#allocation5 + $0x8] sm:$0xff] %v24_v1 }
   0x8   :  { %37 = dma.vmem_to_hbm [thread:$0]  %s33_s12, 256, %s35_s15, [#allocation4]  }
   0x9   :  { %96 = dma.done.wait [#allocation4], 256  }
   0xa   :  { %97 = vsyncadd [#allocation4], 4294967040 }
   0xb   :  { %42 = vsyncpa [#allocation3], 1 }
   0xc   :  { %43 = vsyncpa [#allocation4], 1 }

</bundles_post_ra>
